<compile_context>
chip_gen: v7x
topology: tpu7x:2x2x1
jax: 0.10.0
libtpu: 0.0.40
codegen_flags: <defaults>
</compile_context>

<pallas_src>
import functools

import jax
import jax.numpy as jnp
from jax.experimental import pallas as pl
from jax.experimental.pallas import tpu as pltpu


def _round_up(x, m):
    return (x + m - 1) // m * m


def _linear_relu_kernel(x_ref, w_ref, b_ref, o_ref, *, amp):
    """o = relu(x @ w + b); MXU matmul with f32 accumulator, f32 epilogue."""
    x = x_ref[...]
    w = w_ref[...]
    if amp:
        # autocast analogue: bf16 matmul inputs, cast done in-kernel (free VPU
        # work under the MXU), f32 accumulation.
        x = x.astype(jnp.bfloat16)
        w = w.astype(jnp.bfloat16)
    acc = jnp.dot(x, w, preferred_element_type=jnp.float32)
    acc = acc + b_ref[...]                 # bias kept f32, broadcasts [1, N]
    o_ref[...] = jnp.maximum(acc, 0.0).astype(o_ref.dtype)


# Batch tile used only when the (padded) batch is large enough to be worth a
# grid; below this we run a single no-grid invocation with everything in VMEM.
_BATCH_TILE = 256


@functools.partial(jax.jit, static_argnames=("amp",))
def _inner_model(x, w, b, amp):
    """Pallas implementation of the inner model: Linear + ReLU.

    All operands are passed to the kernel in f32; amp=True casts x/w to bf16
    inside the kernel for the MXU matmul and returns bf16 (like autocast).
    """
    out_dtype = jnp.bfloat16 if amp else jnp.float32

    B, F_in = x.shape
    F_out = w.shape[1]

    # Pad to hardware granules: lanes (minor dim) -> 128, sublanes -> 8 (f32)
    # or 16 (bf16 output packing) so loads/stores are full-vreg, lane-dense.
    sub = 16 if amp else 8
    Bp = _round_up(B, sub)
    Fin_p = _round_up(F_in, 128)
    Fout_p = _round_up(F_out, 128)

    kernel = functools.partial(_linear_relu_kernel, amp=amp)

    if Bp <= _BATCH_TILE:
        # Small-batch path: no grid, no pipelining machinery — whole padded
        # operands resident in VMEM, single kernel invocation.
        x_p = jnp.pad(x, ((0, Bp - B), (0, Fin_p - F_in)))
        w_p = jnp.pad(w, ((0, Fin_p - F_in), (0, Fout_p - F_out)))
        b_p = jnp.pad(b, ((0, 0), (0, Fout_p - F_out)))

        out = pl.pallas_call(
            kernel,
            out_shape=jax.ShapeDtypeStruct((Bp, Fout_p), out_dtype),
            in_specs=[
                pl.BlockSpec(memory_space=pltpu.MemorySpace.VMEM),
                pl.BlockSpec(memory_space=pltpu.MemorySpace.VMEM),
                pl.BlockSpec(memory_space=pltpu.MemorySpace.VMEM),
            ],
            out_specs=pl.BlockSpec(memory_space=pltpu.MemorySpace.VMEM),
        )(x_p, w_p, b_p)
    else:
        # Large-batch path: stream batch tiles over a "parallel" grid axis
        # (megacore sharding on v7x), weight/bias stay VMEM-resident
        # (index_map always returns block (0, 0)).
        Bp = _round_up(Bp, _BATCH_TILE)
        x_p = jnp.pad(x, ((0, Bp - B), (0, Fin_p - F_in)))
        w_p = jnp.pad(w, ((0, Fin_p - F_in), (0, Fout_p - F_out)))
        b_p = jnp.pad(b, ((0, 0), (0, Fout_p - F_out)))

        out = pl.pallas_call(
            kernel,
            out_shape=jax.ShapeDtypeStruct((Bp, Fout_p), out_dtype),
            grid=(Bp // _BATCH_TILE,),
            in_specs=[
                pl.BlockSpec((_BATCH_TILE, Fin_p), lambda i: (i, 0)),
                pl.BlockSpec((Fin_p, Fout_p), lambda i: (0, 0)),
                pl.BlockSpec((1, Fout_p), lambda i: (0, 0)),
            ],
            out_specs=pl.BlockSpec((_BATCH_TILE, Fout_p), lambda i: (i, 0)),
            compiler_params=pltpu.CompilerParams(
                dimension_semantics=("parallel",),
                vmem_limit_bytes=64 * 1024 * 1024,  # explicit budget (v7x-safe)
            ),
        )(x_p, w_p, b_p)

    return out[:B, :F_out]


class WarpPredator:
    """JAX/Pallas port of the PyTorch WarpPredator wrapper."""

    def __init__(self, model_params, amp):
        # TODO(synk): the PyTorch module wraps an arbitrary `model`; here the
        # inner model is fixed to a Pallas Linear+ReLU.
        self.w, self.b = model_params
        self.amp = amp
        if self.amp:
            print("USE AMP")

    def forward(self, x, is_eval=False):
        res = _inner_model(x, self.w, self.b, self.amp)
        if is_eval:
            return [0, res]
        else:
            return [res]

    __call__ = forward


def _init_params(key, f_in, f_out):
    kw, kb = jax.random.split(key)
    w = jax.random.normal(kw, (f_in, f_out), dtype=jnp.float32) * 0.1
    b = jax.random.normal(kb, (1, f_out), dtype=jnp.float32) * 0.1
    return w, b


if __name__ == "__main__":
    key = jax.random.PRNGKey(0)
    k_x, k_p = jax.random.split(key)

    batch, f_in, f_out = 2, 32, 32
    x = jax.random.normal(k_x, (batch, f_in), dtype=jnp.float32)
    params = _init_params(k_p, f_in, f_out)

    # amp=False path (f32), train-mode return: [res]
    model_fp32 = WarpPredator(params, amp=False)
    out_train = model_fp32(x)
    assert isinstance(out_train, list) and len(out_train) == 1
    jax.block_until_ready(out_train[0])

    # amp=True path (bf16 autocast analogue), eval-mode return: [0, res]
    model_amp = WarpPredator(params, amp=True)
    out_eval = model_amp(x, is_eval=True)
    assert isinstance(out_eval, list) and len(out_eval) == 2 and out_eval[0] == 0
    jax.block_until_ready(out_eval[1])

    # sanity: Pallas results match a plain-JAX reference
    ref = jnp.maximum(x @ params[0] + params[1], 0.0)
    assert out_train[0].shape == (batch, f_out)
    assert out_eval[1].shape == (batch, f_out)
    assert jnp.allclose(out_train[0], ref, atol=1e-5)
    assert jnp.allclose(out_eval[1].astype(jnp.float32), ref, atol=1e-1)

    print("KERNEL_OK")
</pallas_src>

<mosaic_0001>
module attributes {stable_mosaic.version = 11 : i64} {
  func.func @_linear_relu_kernel(%arg0: memref<8x128xf32, #tpu.memory_space<vmem>>, %arg1: memref<128x128xf32, #tpu.memory_space<vmem>>, %arg2: memref<1x128xf32, #tpu.memory_space<vmem>>, %arg3: memref<8x128xf32, #tpu.memory_space<vmem>>) attributes {dimension_semantics = [], scalar_prefetch = 0 : i64, scratch_operands = 0 : i64, tpu.core_type = #tpu.core_type<tc>} {
    %c0 = arith.constant 0 : index
    %c0_0 = arith.constant 0 : index
    %0 = vector.load %arg0[%c0, %c0_0] : memref<8x128xf32, #tpu.memory_space<vmem>>, vector<8x128xf32>
    %c0_1 = arith.constant 0 : index
    %c0_2 = arith.constant 0 : index
    %1 = vector.load %arg1[%c0_1, %c0_2] : memref<128x128xf32, #tpu.memory_space<vmem>>, vector<128x128xf32>
    %cst = arith.constant dense<0.000000e+00> : vector<8x128xf32>
    %2 = tpu.matmul %0, %1, %cst {dimension_numbers = #tpu.dot_dimension_numbers<[1], [0], [0], [1], [0, 0, 1, 1], [], []>} : vector<8x128xf32>, vector<128x128xf32>, vector<8x128xf32> -> vector<8x128xf32>
    %c0_3 = arith.constant 0 : index
    %c0_4 = arith.constant 0 : index
    %3 = vector.load %arg2[%c0_3, %c0_4] : memref<1x128xf32, #tpu.memory_space<vmem>>, vector<1x128xf32>
    %4 = vector.broadcast %3 : vector<1x128xf32> to vector<8x128xf32>
    %5 = arith.addf %2, %4 : vector<8x128xf32>
    %cst_5 = arith.constant 0.000000e+00 : f32
    %6 = vector.broadcast %cst_5 : f32 to vector<8x128xf32>
    %7 = arith.maximumf %5, %6 : vector<8x128xf32>
    %c0_6 = arith.constant 0 : index
    %c0_7 = arith.constant 0 : index
    %8 = vector.load %arg3[%c0_6, %c0_7] : memref<8x128xf32, #tpu.memory_space<vmem>>, vector<8x128xf32>
    tpu.vector_store %arg3[%c0_6, %c0_7], %7 {strides = array<i32>} : memref<8x128xf32, #tpu.memory_space<vmem>>, vector<8x128xf32>,
    return
  }
}

</mosaic_0001>

<bundles_post_ra>
// kernel: _inner_model.1
= control target key start
LH: loop header
LB: loop body
LE: loop exit
PB: predicated region body
PF: predicated region fallthrough
CT: control target
= control target key end

     0   :  { %v194_v0 = vmov 0.0|0.0   ;;  %vm195_vm0 = vmmov 0   ;;  %v196_v4 = vmov 0.0   ;;  %s274_s1 = inlined_call_operand.vmem [shape: f32[128,128], index: 1, kind: input, shape index: {}]   ;;  %s275_s0 = inlined_call_operand.vmem [shape: f32[8,128], index: 0, kind: input, shape index: {}]   ;;  %s276_s2 = inlined_call_operand.vmem [shape: f32[1,128], index: 2, kind: input, shape index: {}]   ;;  %s277_s3 = inlined_call_operand.vmem [shape: f32[8,128], index: 3, kind: output, shape index: {}]  }
   0x1   :  { %167 = vmatprep.subr.bf16.mxu0 %v194_v0  ;;  %v15_v1 = vld [vmem:[%s274_s1] sm:$0xff]  ;;  %v16_v2 = vld [vmem:[%s274_s1 + $0x8] sm:$0xff]  ;;  %v17_v3 = vld [vmem:[%s274_s1 + $0x10] sm:$0xff]  ;;  %164 = vmatprep.mubr.msk.f32.mxu0 %vm195_vm0, %v196_v4 }
   0x2   :  { %v168_v5 = vpack.c.bf16 %v16_v2, %v15_v1  ;;  %v18_v6 = vld [vmem:[%s274_s1 + $0x18] sm:$0xff]  ;;  %v19_v8 = vld [vmem:[%s274_s1 + $0x20] sm:$0xff]  ;;  %v20_v9 = vld [vmem:[%s274_s1 + $0x28] sm:$0xff] }
   0x3   :  { %v171_v7 = vpack.c.bf16 %v18_v6, %v17_v3  ;;  %v174_v10 = vpack.c.bf16 %v20_v9, %v19_v8  ;;  %v21_v11 = vld [vmem:[%s274_s1 + $0x30] sm:$0xff]  ;;  %v22_v12 = vld [vmem:[%s274_s1 + $0x38] sm:$0xff]  ;;  %v23_v14 = vld [vmem:[%s274_s1 + $0x40] sm:$0xff] }
   0x4   :  { %169 = vmatpush3.bf16.msra.mxu0 %v168_v5  ;;  %v177_v13 = vpack.c.bf16 %v22_v12, %v21_v11  ;;  %v24_v15 = vld [vmem:[%s274_s1 + $0x48] sm:$0xff]  ;;  %v25_v17 = vld [vmem:[%s274_s1 + $0x50] sm:$0xff]  ;;  %v26_v18 = vld [vmem:[%s274_s1 + $0x58] sm:$0xff] }
   0x5   :  { %170 = vmatprep.subr.bf16.mxu0 %v194_v0  ;;  %v180_v16 = vpack.c.bf16 %v24_v15, %v23_v14  ;;  %v183_v19 = vpack.c.bf16 %v26_v18, %v25_v17  ;;  %v27_v20 = vld [vmem:[%s274_s1 + $0x60] sm:$0xff]  ;;  %v28_v21 = vld [vmem:[%s274_s1 + $0x68] sm:$0xff]  ;;  %v29_v23 = vld [vmem:[%s274_s1 + $0x70] sm:$0xff] }
   0x6   :  { %v186_v22 = vpack.c.bf16 %v28_v21, %v27_v20  ;;  %v30_v24 = vld [vmem:[%s274_s1 + $0x78] sm:$0xff]  ;;  %v14_v26 = vld [vmem:[%s275_s0] sm:$0xff] }
   0x7   :  { %v189_v25 = vpack.c.bf16 %v30_v24, %v29_v23  ;;  %v114_v27 = vld [vmem:[%s276_s2] ss:$0 sm:$0xff] }
   0x8   :  { %172 = vmatpush3.bf16.msra.mxu0 %v171_v7 }
   0x9   :  { %173 = vmatprep.subr.bf16.mxu0 %v194_v0 }
   0xc   :  { %175 = vmatpush3.bf16.msra.mxu0 %v174_v10 }
   0xd   :  { %176 = vmatprep.subr.bf16.mxu0 %v194_v0 }
  0x10   :  { %178 = vmatpush3.bf16.msra.mxu0 %v177_v13 }
  0x11   :  { %179 = vmatprep.subr.bf16.mxu0 %v194_v0 }
  0x14   :  { %181 = vmatpush3.bf16.msra.mxu0 %v180_v16 }
  0x15   :  { %182 = vmatprep.subr.bf16.mxu0 %v194_v0 }
  0x18   :  { %184 = vmatpush3.bf16.msra.mxu0 %v183_v19 }
  0x19   :  { %185 = vmatprep.subr.bf16.mxu0 %v194_v0 }
  0x1c   :  { %187 = vmatpush3.bf16.msra.mxu0 %v186_v22 }
  0x1d   :  { %188 = vmatprep.subr.bf16.mxu0 %v194_v0 }
  0x20   :  { %190 = vmatpush3.bf16.msra.mxu0 %v189_v25 }
  0x23   :  { %165 = vmatmul.mubr.f32.vlgmr.msra.gmra.mrb[0].mxu0 %v14_v26 }
  0xf6   :  { %v104_v28 = vpop.f32.mrb[0].mxu0 }
  0xf7   :  { %v105_v29 = vadd.f32 %v114_v27, %v104_v28  ;;  %v166_v30 = vpop.f32.mrb[1].mxu0 }
  0xf9   :  { %v108_v31 = vmax.f32 %v105_v29, 0.0 }
  0xfb   :  { %109 = vst [vmem:[%s277_s3] sm:$0xff] %v108_v31 }

</bundles_post_ra>
